<compile_context>
chip_gen: v6e
topology: v6e:2x2x1
jax: 0.10.0
libtpu: 0.0.40
codegen_flags: <defaults>
</compile_context>

<pallas_src>
import functools
import math

import jax
import jax.numpy as jnp
from jax import lax
from jax.experimental import pallas as pl
from jax.experimental.pallas import tpu as pltpu


_BN_EPS = 1e-5
_MAX_SINGLE_K = 2048        # K at or below this runs as one unpadded MXU K step


# ----------------------------------------------------------------------------
# Pallas kernel: tiled bf16 matmul with fused per-channel affine (+ ReLU)
# ----------------------------------------------------------------------------
def _matmul_affine_kernel(a_ref, b_ref, scale_ref, shift_ref, o_ref, acc_ref,
                          *, relu):
    k = pl.program_id(2)

    @pl.when(k == 0)
    def _():
        acc_ref[...] = jnp.zeros_like(acc_ref)

    acc_ref[...] += jnp.dot(a_ref[...], b_ref[...],
                            preferred_element_type=jnp.float32)

    @pl.when(k == pl.num_programs(2) - 1)
    def _():
        y = acc_ref[...] * scale_ref[...] + shift_ref[...]
        if relu:
            y = jnp.maximum(y, 0.0)
        o_ref[...] = y.astype(o_ref.dtype)


def _round_up(x, m):
    return ((x + m - 1) // m) * m


def _largest_div_tile(dim, cap):
    """Largest multiple of 128 that divides `dim` (a multiple of 128), <= cap."""
    best = 128
    t = 128
    lim = min(dim, cap)
    while t <= lim:
        if dim % t == 0:
            best = t
        t += 128
    return best


def _pick_tm(M):
    for cand in (1024, 512, 256, 128):
        if M >= cand and M % cand == 0:
            return cand
    if M >= 1024:
        return 1024                       # pads M up to a multiple of 1024
    return max(16, _round_up(M, 16))      # small M: single tile


def matmul_affine(a, b, scale, shift, n_out, *, relu, out_dtype):
    """maybe_relu((a @ b) * scale + shift)[:, :n_out].

    a      : (M, K)  activations / patches (cast to bf16 here)
    b      : (Kp, Np) pre-prepared bf16 weights
    scale  : (1, Np)  f32 per-channel BN scale (ones when no BN)
    shift  : (1, Np)  f32 per-channel shift (bias folded through BN)
    """
    M, K = a.shape
    Kp, Np = b.shape

    tm = _pick_tm(M)
    Mp = _round_up(M, tm)
    tn = Np if Np < 128 else _largest_div_tile(Np, 512)
    tk = Kp if Kp <= _MAX_SINGLE_K else _largest_div_tile(Kp, _MAX_SINGLE_K)
    # v7x has 2 TensorCores: ensure >=2 parallel grid steps for single-tile layers.
    if (Mp // tm) * (Np // tn) == 1 and tn % 256 == 0:
        tn //= 2

    a_p = a.astype(jnp.bfloat16)
    if Mp != M or Kp != K:
        a_p = jnp.pad(a_p, ((0, Mp - M), (0, Kp - K)))

    grid = (Mp // tm, Np // tn, Kp // tk)
    out_bytes = jnp.dtype(out_dtype).itemsize
    cost = pl.CostEstimate(
        flops=2 * Mp * Kp * Np,
        transcendentals=0,
        bytes_accessed=(Mp * Kp + Kp * Np) * 2 + Mp * Np * out_bytes)

    out = pl.pallas_call(
        functools.partial(_matmul_affine_kernel, relu=relu),
        out_shape=jax.ShapeDtypeStruct((Mp, Np), out_dtype),
        grid_spec=pltpu.PrefetchScalarGridSpec(
            num_scalar_prefetch=0,
            grid=grid,
            in_specs=[
                pl.BlockSpec((tm, tk), lambda i, j, k: (i, k)),
                pl.BlockSpec((tk, tn), lambda i, j, k: (k, j)),
                pl.BlockSpec((1, tn), lambda i, j, k: (0, j)),
                pl.BlockSpec((1, tn), lambda i, j, k: (0, j)),
            ],
            out_specs=pl.BlockSpec((tm, tn), lambda i, j, k: (i, j)),
            scratch_shapes=[pltpu.VMEM((tm, tn), jnp.float32)],
        ),
        compiler_params=pltpu.CompilerParams(
            dimension_semantics=("parallel", "parallel", "arbitrary"),
            vmem_limit_bytes=32 * 1024 * 1024,   # safe on v5e/v6e/v7x
        ),
        cost_estimate=cost,
    )(a_p, b, scale, shift)
    if Mp != M or Np != n_out:
        out = out[:M, :n_out]
    return out


# ----------------------------------------------------------------------------
# Conv / ConvTranspose glue (NHWC, bf16 patches, Pallas matmul)
# ----------------------------------------------------------------------------
def _im2col_nhwc(x, kh, kw, stride, padding):
    """x: (N, H, W, C) -> patches (N*Ho*Wo, kh*kw*C); keeps C on the lane dim."""
    N, H, W, C = x.shape
    if kh == 1 and kw == 1 and stride == 1 and padding == 0:
        return x.reshape(N * H * W, C), (N, H, W)
    xp = jnp.pad(x, ((0, 0), (padding, padding), (padding, padding), (0, 0)))
    Ho = (H + 2 * padding - kh) // stride + 1
    Wo = (W + 2 * padding - kw) // stride + 1
    cols = []
    for di in range(kh):
        for dj in range(kw):
            cols.append(xp[:, di:di + stride * (Ho - 1) + 1:stride,
                              dj:dj + stride * (Wo - 1) + 1:stride, :])
    p = jnp.stack(cols, axis=3)                    # (N, Ho, Wo, kh*kw, C)
    return p.reshape(N * Ho * Wo, kh * kw * C), (N, Ho, Wo)


def conv_block(x, arrs, meta, *, stride=1, padding=1):
    """Conv2d -> BatchNorm2d(eval affine) -> (ReLU); NHWC in / NHWC out."""
    patches, (N, Ho, Wo) = _im2col_nhwc(x, meta["kh"], meta["kw"], stride, padding)
    y = matmul_affine(patches, arrs["w"], arrs["scale"], arrs["shift"],
                      meta["cout"], relu=meta["relu"], out_dtype=meta["out_dtype"])
    return y.reshape(N, Ho, Wo, meta["cout"])


def conv_transpose_2x2(x, arrs, meta):
    """ConvTranspose2d(kernel_size=2, stride=2); NHWC in / NHWC out."""
    N, H, W, C = x.shape
    cout = meta["cout"]
    y = matmul_affine(x.reshape(N * H * W, C), arrs["w"], arrs["scale"],
                      arrs["shift"], 4 * cout, relu=False, out_dtype=jnp.bfloat16)
    # TODO(synk): emit the 2x2 interleave from the kernel via a strided output
    # index_map instead of this XLA transpose (one HBM round-trip per up block).
    y = y.reshape(N, H, W, 2, 2, cout)
    y = y.transpose(0, 1, 3, 2, 4, 5).reshape(N, 2 * H, 2 * W, cout)
    return y


# ----------------------------------------------------------------------------
# Parameter construction: raw torch-layout weights -> (arrays, static meta)
# ----------------------------------------------------------------------------
def _pad_cols(wmat, scale, shift):
    K, Nc = wmat.shape
    Kp = K if (K <= _MAX_SINGLE_K or K % 128 == 0) else _round_up(K, 128)
    Np = Nc if (Nc <= 128 or Nc % 128 == 0) else _round_up(Nc, 128)
    w = jnp.pad(wmat.astype(jnp.bfloat16), ((0, Kp - K), (0, Np - Nc)))
    s = jnp.pad(scale.astype(jnp.float32), (0, Np - Nc)).reshape(1, Np)
    t = jnp.pad(shift.astype(jnp.float32), (0, Np - Nc)).reshape(1, Np)
    return w, s, t


def prep_conv(w, b, *, bn=True, relu=True, out_dtype=jnp.bfloat16):
    """w: (Cout, Cin, kh, kw) torch layout -> bf16 (K, Cout) + f32 affine rows."""
    cout, cin, kh, kw = w.shape
    if bn:
        scale = jnp.full((cout,), 1.0 / math.sqrt(1.0 + _BN_EPS), jnp.float32)
    else:
        scale = jnp.ones((cout,), jnp.float32)
    shift = b.astype(jnp.float32) * scale
    # K rows ordered (di, dj, ci) to match _im2col_nhwc.
    wmat = jnp.transpose(w, (2, 3, 1, 0)).reshape(kh * kw * cin, cout)
    wp, sp, tp = _pad_cols(wmat, scale, shift)
    arrs = {"w": wp, "scale": sp, "shift": tp}
    meta = {"kh": kh, "kw": kw, "cout": cout, "relu": relu, "out_dtype": out_dtype}
    return arrs, meta


def prep_convT(w, b):
    """w: (Cin, Cout, 2, 2) torch ConvTranspose layout -> bf16 (Cin, 4*Cout)."""
    cin, cout = w.shape[0], w.shape[1]
    wmat = jnp.transpose(w, (0, 2, 3, 1)).reshape(cin, 4 * cout)  # cols (di, dj, co)
    scale = jnp.ones((4 * cout,), jnp.float32)
    shift = jnp.tile(b.astype(jnp.float32), 4)
    wp, sp, tp = _pad_cols(wmat, scale, shift)
    return {"w": wp, "scale": sp, "shift": tp}, {"cout": cout}


def _conv_params(key, cin, cout, k):
    wk, bk = jax.random.split(key)
    fan_in = cin * k * k
    w = jax.random.normal(wk, (cout, cin, k, k), jnp.float32) * math.sqrt(2.0 / fan_in)
    b = jax.random.normal(bk, (cout,), jnp.float32) * 0.01
    return w, b


def _convT_params(key, cin, cout):
    wk, bk = jax.random.split(key)
    w = jax.random.normal(wk, (cin, cout, 2, 2), jnp.float32) * math.sqrt(2.0 / (cin * 4))
    b = jax.random.normal(bk, (cout,), jnp.float32) * 0.01
    return w, b


def init_params(key, n_classes=1):
    ks = jax.random.split(key, 16)
    params, meta = {}, {}

    def add(name, prepped):
        params[name], meta[name] = prepped

    # down blocks (stand-ins for the BiT encoder, see TODO(synk) above)
    add("down0", prep_conv(*_conv_params(ks[0], 3, 64, 7)))       # 64   @ /4
    add("down1", prep_conv(*_conv_params(ks[1], 64, 256, 3)))     # 256  @ /4
    add("down2", prep_conv(*_conv_params(ks[2], 256, 512, 3)))    # 512  @ /8
    add("down3", prep_conv(*_conv_params(ks[3], 512, 1024, 3)))   # 1024 @ /16
    # bridge: ConvBlock(1024, 1024) x2
    add("bridge0", prep_conv(*_conv_params(ks[4], 1024, 1024, 3)))
    add("bridge1", prep_conv(*_conv_params(ks[5], 1024, 1024, 3)))
    # up block 0: UpBlock(1024, 512)
    add("up0_t", prep_convT(*_convT_params(ks[6], 1024, 512)))
    add("up0_c1", prep_conv(*_conv_params(ks[7], 1024, 512, 3)))
    add("up0_c2", prep_conv(*_conv_params(ks[8], 512, 512, 3)))
    # up block 1: UpBlock(512, 256)
    add("up1_t", prep_convT(*_convT_params(ks[9], 512, 256)))
    add("up1_c1", prep_conv(*_conv_params(ks[10], 512, 256, 3)))
    add("up1_c2", prep_conv(*_conv_params(ks[11], 256, 256, 3)))
    # up block 2: UpBlock(in=67, out=64, up_in=256, up_out=64, factor=4)
    add("up2_t1", prep_convT(*_convT_params(ks[12], 256, 64)))
    add("up2_t2", prep_convT(*_convT_params(ks[13], 64, 64)))
    add("up2_c1", prep_conv(*_conv_params(ks[14], 67, 64, 3)))
    add("up2_c2", prep_conv(*_conv_params(ks[15], 64, 64, 3)))
    # out: Conv2d(64, n_classes, 1), no BN, no ReLU, f32 output
    add("out", prep_conv(*_conv_params(jax.random.fold_in(key, 99), 64, n_classes, 1),
                         bn=False, relu=False, out_dtype=jnp.float32))
    return params, meta


# ----------------------------------------------------------------------------
# ResnetUNet forward (NCHW interface, NHWC/bf16 internally)
# ----------------------------------------------------------------------------
def resnet_unet_forward(x_nchw, params, meta, with_output_feature_map=False):
    x = jnp.transpose(x_nchw, (0, 2, 3, 1)).astype(jnp.bfloat16)   # -> NHWC
    int_features = [x]
    # ---- down path (encoder stand-in) ----
    h = conv_block(x, params["down0"], meta["down0"], stride=4, padding=3)
    int_features.append(h)                       # 64   @ H/4
    h = conv_block(h, params["down1"], meta["down1"], stride=1, padding=1)
    int_features.append(h)                       # 256  @ H/4
    h = conv_block(h, params["down2"], meta["down2"], stride=2, padding=1)
    int_features.append(h)                       # 512  @ H/8
    h = conv_block(h, params["down3"], meta["down3"], stride=2, padding=1)
    int_features.append(h)                       # 1024 @ H/16
    # ---- bridge ----
    h = conv_block(h, params["bridge0"], meta["bridge0"])
    h = conv_block(h, params["bridge1"], meta["bridge1"])
    # TODO(synk): fuse the skip concats below into the following conv's K grid
    # (two accumulating K partitions) to avoid materializing the concat tensor.
    # ---- up block 0: (1024 -> 512), skip = int_features[-2] ----
    h = conv_transpose_2x2(h, params["up0_t"], meta["up0_t"])
    h = jnp.concatenate([h, int_features[-2]], axis=-1)   # lane-contiguous concat
    h = conv_block(h, params["up0_c1"], meta["up0_c1"])
    h = conv_block(h, params["up0_c2"], meta["up0_c2"])
    # ---- up block 1: (512 -> 256), skip = int_features[-3] ----
    h = conv_transpose_2x2(h, params["up1_t"], meta["up1_t"])
    h = jnp.concatenate([h, int_features[-3]], axis=-1)
    h = conv_block(h, params["up1_c1"], meta["up1_c1"])
    h = conv_block(h, params["up1_c2"], meta["up1_c2"])
    # ---- up block 2: factor=4, skip = int_features[0] (raw input) ----
    h = conv_transpose_2x2(h, params["up2_t1"], meta["up2_t1"])
    h = conv_transpose_2x2(h, params["up2_t2"], meta["up2_t2"])
    h = jnp.concatenate([h, int_features[0]], axis=-1)
    h = conv_block(h, params["up2_c1"], meta["up2_c1"])
    h = conv_block(h, params["up2_c2"], meta["up2_c2"])
    output_feature_map = h
    # ---- out: plain 1x1 conv, no BN, no ReLU ----
    out = conv_block(h, params["out"], meta["out"], stride=1, padding=0)
    out = jnp.transpose(out, (0, 3, 1, 2))                 # -> NCHW
    if with_output_feature_map:
        return out, jnp.transpose(output_feature_map, (0, 3, 1, 2))
    return out


# ----------------------------------------------------------------------------
if __name__ == "__main__":
    key = jax.random.PRNGKey(0)
    xkey, pkey, ckey = jax.random.split(key, 3)

    params, meta = init_params(pkey, n_classes=1)

    # ---- sanity check: one ConvBlock against a lax.conv reference -----------
    xt = jax.random.normal(ckey, (1, 8, 8, 64), jnp.float32).astype(jnp.bfloat16)
    got = conv_block(xt, params["down1"], meta["down1"], stride=1, padding=1)
    wf = params["down1"]["w"].astype(jnp.float32).reshape(3, 3, 64, 256)
    ref = lax.conv_general_dilated(
        xt.astype(jnp.float32), wf, window_strides=(1, 1),
        padding=((1, 1), (1, 1)), dimension_numbers=("NHWC", "HWIO", "NHWC"))
    ref = jnp.maximum(ref * params["down1"]["scale"].reshape(1, 1, 1, -1)
                      + params["down1"]["shift"].reshape(1, 1, 1, -1), 0.0)
    err = float(jnp.max(jnp.abs(got.astype(jnp.float32) - ref)))
    assert err < 0.1, f"conv_block mismatch vs lax reference: {err}"

    # ---- full forward --------------------------------------------------------
    # small input consistent with the module: NCHW, 3 channels, 32x32 spatial
    x = jax.random.normal(xkey, (2, 3, 32, 32), jnp.float32)
    fwd = jax.jit(lambda xx, pp: resnet_unet_forward(xx, pp, meta))
    y = fwd(x, params)
    jax.block_until_ready(y)

    assert y.shape == (2, 1, 32, 32), y.shape
    assert bool(jnp.all(jnp.isfinite(y)))
    print("KERNEL_OK")
</pallas_src>

<mosaic_0001>
module attributes {stable_mosaic.version = 11 : i64} {
  func.func @_matmul_affine_kernel(%arg0: i32, %arg1: i32, %arg2: i32, %arg3: memref<64x576xbf16, #tpu.memory_space<vmem>>, %arg4: memref<576x128xbf16, #tpu.memory_space<vmem>>, %arg5: memref<1x128xf32, #tpu.memory_space<vmem>>, %arg6: memref<1x128xf32, #tpu.memory_space<vmem>>, %arg7: memref<64x128xbf16, #tpu.memory_space<vmem>>, %arg8: memref<64x128xf32, #tpu.memory_space<vmem>>) attributes {dimension_semantics = [#tpu.dimension_semantics<parallel>, #tpu.dimension_semantics<parallel>, #tpu.dimension_semantics<arbitrary>], iteration_bounds = array<i64: 1, 2, 1>, scalar_prefetch = 0 : i64, scratch_operands = 1 : i64, tpu.core_type = #tpu.core_type<tc>, window_params = [{transform_indices = @transform_0, window_bounds = array<i64: 64, 576>}, {transform_indices = @transform_1, window_bounds = array<i64: 576, 128>}, {transform_indices = @transform_2, window_bounds = array<i64: 1, 128>}, {transform_indices = @transform_3, window_bounds = array<i64: 1, 128>}, {transform_indices = @transform_4, window_bounds = array<i64: 64, 128>}]} {
    %c0_i32 = arith.constant 0 : i32
    %0 = arith.cmpi eq, %arg2, %c0_i32 : i32
    %1 = arith.extui %0 : i1 to i32
    %c0_i32_0 = arith.constant 0 : i32
    %2 = arith.cmpi ne, %1, %c0_i32_0 : i32
    scf.if %2 {
      %cst_10 = arith.constant 0.000000e+00 : f32
      %12 = vector.broadcast %cst_10 : f32 to vector<64x128xf32>
      %c0_11 = arith.constant 0 : index
      %c0_12 = arith.constant 0 : index
      %13 = vector.load %arg8[%c0_11, %c0_12] : memref<64x128xf32, #tpu.memory_space<vmem>>, vector<64x128xf32>
      tpu.vector_store %arg8[%c0_11, %c0_12], %12 {strides = array<i32>} : memref<64x128xf32, #tpu.memory_space<vmem>>, vector<64x128xf32>,
    } else {
    }
    %c0 = arith.constant 0 : index
    %c0_1 = arith.constant 0 : index
    %3 = vector.load %arg8[%c0, %c0_1] : memref<64x128xf32, #tpu.memory_space<vmem>>, vector<64x128xf32>
    %c0_2 = arith.constant 0 : index
    %c0_3 = arith.constant 0 : index
    %4 = vector.load %arg3[%c0_2, %c0_3] : memref<64x576xbf16, #tpu.memory_space<vmem>>, vector<64x576xbf16>
    %c0_4 = arith.constant 0 : index
    %c0_5 = arith.constant 0 : index
    %5 = vector.load %arg4[%c0_4, %c0_5] : memref<576x128xbf16, #tpu.memory_space<vmem>>, vector<576x128xbf16>
    %cst = arith.constant dense<0.000000e+00> : vector<64x128xf32>
    %6 = tpu.matmul %4, %5, %cst {dimension_numbers = #tpu.dot_dimension_numbers<[1], [0], [0], [1], [0, 0, 1, 1], [], []>} : vector<64x576xbf16>, vector<576x128xbf16>, vector<64x128xf32> -> vector<64x128xf32>
    %7 = arith.addf %3, %6 : vector<64x128xf32>
    %c0_6 = arith.constant 0 : index
    %c0_7 = arith.constant 0 : index
    %8 = vector.load %arg8[%c0_6, %c0_7] : memref<64x128xf32, #tpu.memory_space<vmem>>, vector<64x128xf32>
    tpu.vector_store %arg8[%c0_6, %c0_7], %7 {strides = array<i32>} : memref<64x128xf32, #tpu.memory_space<vmem>>, vector<64x128xf32>,
    %c0_i32_8 = arith.constant 0 : i32
    %9 = arith.cmpi eq, %arg2, %c0_i32_8 : i32
    %10 = arith.extui %9 : i1 to i32
    %c0_i32_9 = arith.constant 0 : i32
    %11 = arith.cmpi ne, %10, %c0_i32_9 : i32
    scf.if %11 {
      %c0_10 = arith.constant 0 : index
      %c0_11 = arith.constant 0 : index
      %12 = vector.load %arg8[%c0_10, %c0_11] : memref<64x128xf32, #tpu.memory_space<vmem>>, vector<64x128xf32>
      %c0_12 = arith.constant 0 : index
      %c0_13 = arith.constant 0 : index
      %13 = vector.load %arg5[%c0_12, %c0_13] : memref<1x128xf32, #tpu.memory_space<vmem>>, vector<1x128xf32>
      %14 = vector.broadcast %13 : vector<1x128xf32> to vector<64x128xf32>
      %15 = arith.mulf %12, %14 : vector<64x128xf32>
      %c0_14 = arith.constant 0 : index
      %c0_15 = arith.constant 0 : index
      %16 = vector.load %arg6[%c0_14, %c0_15] : memref<1x128xf32, #tpu.memory_space<vmem>>, vector<1x128xf32>
      %17 = vector.broadcast %16 : vector<1x128xf32> to vector<64x128xf32>
      %18 = arith.addf %15, %17 : vector<64x128xf32>
      %cst_16 = arith.constant 0.000000e+00 : f32
      %19 = vector.broadcast %cst_16 : f32 to vector<64x128xf32>
      %20 = arith.maximumf %18, %19 : vector<64x128xf32>
      %21 = arith.truncf %20 : vector<64x128xf32> to vector<64x128xbf16>
      %c0_17 = arith.constant 0 : index
      %c0_18 = arith.constant 0 : index
      %22 = vector.load %arg7[%c0_17, %c0_18] : memref<64x128xbf16, #tpu.memory_space<vmem>>, vector<64x128xbf16>
      tpu.vector_store %arg7[%c0_17, %c0_18], %21 {strides = array<i32>} : memref<64x128xbf16, #tpu.memory_space<vmem>>, vector<64x128xbf16>,
    } else {
    }
    return
  }
  func.func @transform_0(%arg0: i32, %arg1: i32, %arg2: i32) -> (i32, i32) {
    %c0_i32 = arith.constant 0 : i32
    return %arg0, %arg2 : i32, i32
  }
  func.func @transform_1(%arg0: i32, %arg1: i32, %arg2: i32) -> (i32, i32) {
    %c0_i32 = arith.constant 0 : i32
    return %arg2, %arg1 : i32, i32
  }
  func.func @transform_2(%arg0: i32, %arg1: i32, %arg2: i32) -> (i32, i32) {
    %c0_i32 = arith.constant 0 : i32
    %c0_i32_0 = arith.constant 0 : i32
    return %c0_i32, %arg1 : i32, i32
  }
  func.func @transform_3(%arg0: i32, %arg1: i32, %arg2: i32) -> (i32, i32) {
    %c0_i32 = arith.constant 0 : i32
    %c0_i32_0 = arith.constant 0 : i32
    return %c0_i32, %arg1 : i32, i32
  }
  func.func @transform_4(%arg0: i32, %arg1: i32, %arg2: i32) -> (i32, i32) {
    %c0_i32 = arith.constant 0 : i32
    return %arg0, %arg1 : i32, i32
  }
}

</mosaic_0001>

<bundles_post_ra>
// kernel: tpu_custom_call.1
= control target key start
LH: loop header
LB: loop body
LE: loop exit
PB: predicated region body
PF: predicated region fallthrough
CT: control target
= control target key end

     0   :  { %9 = vsyncpa [#allocation4], 0  ;;  %s1961_s0 = inlined_call_operand.hbm [shape: bf16[64,576], index: 0, kind: input, shape index: {}]   ;;  %s1962_s1 = inlined_call_operand.hbm [shape: bf16[576,256], index: 1, kind: input, shape index: {}]   ;;  %s1963_s2 = inlined_call_operand.vmem [shape: f32[1,256], index: 2, kind: input, shape index: {}]   ;;  %s1964_s3 = inlined_call_operand.vmem [shape: f32[1,256], index: 3, kind: input, shape index: {}]   ;;  %s1965_s4 = inlined_call_operand.hbm [shape: bf16[64,256], index: 4, kind: output, shape index: {}]  }
   0x1   :  { %10 = vsyncpa [#allocation7], 0 }
   0x2   :  { %12 = vsyncpa [#allocation7 + $0x1], 0 }
   0x3   :  { %13 = vsyncpa [#allocation5], 0 }
   0x4   :  { %15 = vsyncpa [#allocation5 + $0x1], 0  ;;  %s1735_s15 = smov 0   ;;  %s1737_s16 = smov 0  }
   0x5   :  { %s1739_s17 = smov 0   ;;  %s1741_s18 = smov 0  }
   0x6   :  { %s1743_s19 = smov 0   ;;  %s1745_s20 = smov 0  }
   0x7 LB: > { %1972 = sst [smem:[#allocation12_spill]] %s1677_s15  ;;  %s1186_s21 = sadd.s32 4294967295, %s1697_s20   ;;  %s1697_s20 = sphi %s1745_s20, %s21_s20   ;;  %s1693_s19 = sphi %s1743_s19, %s1995_s19   ;;  %s1689_s18 = sphi %s1741_s18, %s1994_s18   ;;  %s1685_s17 = sphi %s1739_s17, %s1993_s17   ;;  %s1681_s16 = sphi %s1737_s16, %s1992_s16   ;;  %s1677_s15 = sphi %s1735_s15, %s1991_s15  }
   0x8   : > { %1973 = sst [smem:[#allocation13_spill]] %s1697_s20  ;;  %s1187_s22 = sadd.s32 4294967294, %s1697_s20  }
   0x9   : > { %p84_p0 = scmp.ne.s32.totalorder %s1685_s17, %s1681_s16  ;;  %p85_p1 = scmp.eq.s32.totalorder %s1697_s20, 0 }
   0xa   : > { %p90_p2 = scmp.ne.s32.totalorder %s1681_s16, %s1677_s15  ;;  %p1772_p3 = scmp.eq.s32.totalorder %s1186_s21, 0 }
   0xb   : > { %p1776_p4 = por %p85_p1, %p84_p0  ;;  %p168_p5 = scmp.eq.s32.totalorder %s1186_s21, 1 }
   0xc   : > { %p1782_p6 = por %p1772_p3, %p90_p2  ;;  %p174_p7 = scmp.eq.s32.totalorder %s1187_s22, 1 }
   0xd   : > { %p1786_p8 = por %p168_p5, %p84_p0  ;;  %p1188_p9 = scmp.ge.s32.totalorder %s1697_s20, 1 }
   0xe   : > { %s1976_s25 = scalar_select %p1782_p6, 1, 0 }
   0xf   : > { %s1977_s26 = scalar_select %p1786_p8, 1, 0 }
  0x10   : > { %p1791_p10 = por %p174_p7, %p90_p2  ;;  %p181_p11 = scmp.lt.s32.totalorder %s1697_s20, 3 }
  0x11   : > { %s1699_s29 = smov [#allocation3]   ;;  %p1435_p1 = scmp.lt.s32.totalorder %s1697_s20, 2 }
  0x12   : > { %s1978_s27 = scalar_select %p1791_p10, 1, 0 }
  0x13   : > { %p1796_p12 = pnand %p1188_p9, %p181_p11  ;;  %s199_s30 = sshll.u32 %s1699_s29, 4  ;;  %s200_s30 = int_to_ptr.vmem [resolvable:$true] %s199_s30 }
  0x14   : > { %1979 = sst [smem:[#allocation14_spill]] %s1978_s27  ;;  %p1812_p2 = pnand %p1435_p1, %p1776_p4 }
  0x15   : > { %p1422_p13 = pneg %p1796_p12  ;;  %s36_s7 = sadd.s32 1, %s1693_s19 }
  0x16   : > { %s1570_s8 = scalar_lea.vmem %s200_s30, 2560  ;;  %p1578_p0 = scmp.lt.s32.totalorder %s200_s30, %s200_s30 }
  0x17   : > { %p1806_p5 = pnand %p1422_p13, %p1772_p3  ;;  %p1571_p9 = scmp.ne.s32.totalorder %s200_s30, %s1570_s8 }
  0x18   : > { %p1579_p8 = scmp.lt.s32.totalorder %s1570_s8, %s1570_s8 }
  0x19   : > { %p1561_p7 = pneg %p1806_p5 }
  0x1a   : > { %p1580_p6 = por %p1579_p8, %p1578_p0 }
  0x1b   : > { %p1573_p11 = pnand %p1571_p9, %p1561_p7 }
  0x1d   : > { %p1574_p10 = pneg %p1573_p11 }
  0x1f   : > { %p1581_p13 = pnand %p1580_p6, %p1574_p10 }
  0x21   : > { %1584 = shalt.err (!%p1581_p13)
}
  0x22   : > { %s1700_s9 = smov 320   ;;  %s1701_s10 = smov 20  }
  0x23   : > { %1425 = dma.hbm_to_vmem [thread:$0]  (!%p1806_p5), %s1961_s0, 2560, %s200_s30, [#allocation4], %s1700_s9, %s1700_s9, %s1701_s10  }
  0x24   : > { %p38_p4 = scmp.ge.s32.totalorder %s36_s7, 2  ;;  %s77_s13 = sadd.s32 1, %s1685_s17 }
  0x25   : > { %s213_s14 = sand.u32 1, %s1685_s17   ;;  %s1191_s24 = sshll.u32 %s1693_s19, 6 }
  0x26   : > { %s1997_s7 = smov (%p38_p4, %s36_s7), 0  ;;  %s1412_s21 = smul.u32 288, %s213_s14 }
  0x27   : > { %s73_s22 = ssub.s32 %s1693_s19, %s1997_s7  ;;  %s225_s20 = scalar_lea.hbm %s1962_s1, %s1191_s24 }
  0x28   : > { %p75_p6 = scmp.eq.s32.totalorder %s73_s22, 0  ;;  %s217_s5 = scalar_lea.vmem [#allocation6], %s1412_s21 }
  0x29   : > { %s226_s27 = sshll.u32 %s217_s5, 4  ;;  %s214_s30 = scalar_lea.sflag [#allocation7], %s213_s14  ;;  %s227_s27 = int_to_ptr.vmem [resolvable:$true] %s226_s27 }
  0x2a   : > { %s1835_s15 = scalar_select %p75_p6, %s1685_s17, %s77_s13  }
  0x2b   : > { %p1587_p8 = pneg %p1812_p2  ;;  %s1598_s9 = scalar_lea.vmem %s227_s27, 4608 }
  0x2c   : > { %p1599_p10 = scmp.ne.s32.totalorder %s227_s27, %s1598_s9  ;;  %s1702_s10 = smov [#allocation6]  }
  0x2d   : > { %s1603_s11 = sshll.u32 %s1702_s10, 4  ;;  %s1604_s11 = int_to_ptr.vmem [resolvable:$false] %s1603_s11 }
  0x2e   : > { %p1601_p0 = pnand %p1599_p10, %p1587_p8  ;;  %s1605_s12 = scalar_lea.vmem %s1604_s11, 9216 }
  0x2f   : > { %p1606_p5 = scmp.lt.s32.totalorder %s227_s27, %s1604_s11  ;;  %p1607_p7 = scmp.lt.s32.totalorder %s1605_s12, %s1598_s9 }
  0x30   : > { %p1602_p1 = pneg %p1601_p0 }
  0x31   : > { %p1608_p9 = por %p1607_p7, %p1606_p5 }
  0x33   : > { %p1609_p11 = pnand %p1608_p9, %p1602_p1 }
  0x35   : > { %1612 = shalt.err (!%p1609_p11)
}
  0x36   : > { %s1703_s21 = smov 128   ;;  %s1704_s13 = smov 64  }
  0x37   : > { %s1705_s22 = smov 4   ;;  %250 = sbr.rel (%p1796_p12) target bundleno = 357 (0x165), region = 36 }
  0x38   : > { %1429 = dma.hbm_to_vmem [thread:$0]  (!%p1812_p2), %s225_s20, 4608, %s227_s27, %s214_s30, %s1703_s21, %s1704_s13, %s1705_s22  }
  0x3c   : > { %1664 = dma.done.wait (%p1772_p3), [#allocation4], 2560  }
  0x3d   : > { %1666 = vsyncadd (%p1772_p3), [#allocation4], 4294964736  ;;  %s1848_s14 = sand.u32 1, %s1681_s16   ;;  %p1983_p2 = scmp.ne.s32.totalorder %s1976_s25, 0 }
  0x3e   : > { %s1413_s24 = smul.u32 288, %s1848_s14  ;;  %s257_s29 = scalar_lea.sflag [#allocation7], %s1848_s14 }
  0x40   : > { %s1852_s8 = scalar_lea.vmem [#allocation6], %s1413_s24 }
  0x41   : > { %1668 = dma.done.wait (%p1983_p2), %s257_s29, 4608  }
  0x42   : > { %1670 = vsyncadd (%p1983_p2), %s257_s29, 4294962688  ;;  %v1495_v0 = vld [vmem:[%s1852_s8 + $0x78] sm:$0xff]   ;;  %v1499_v4 = vld [vmem:[%s1852_s8 + $0x70] sm:$0xff]   ;;  %vm734_vm0 = vcmask 523264   ;;  %p294_p3 = scmp.lt.s32.totalorder %s1689_s18, 1  ;;  %s1194_s30 = sshll.u32 %s1848_s14, 5 }
  0x43   : > { %v1496_v1 = vld [vmem:[%s1852_s8 + $0xf8] sm:$0xff]   ;;  %1300 = vmatprep.subr.bf16.mxu0 %v1495_v0  ;;  %v1500_v5 = vld [vmem:[%s1852_s8 + $0xf0] sm:$0xff]   ;;  %v1503_v8 = vld [vmem:[%s1852_s8 + $0x68] sm:$0xff]   ;;  %s290_s9 = scalar_lea.vmem [#allocation8], %s1194_s30  ;;  %s1266_s11 = sshll.u32 %s1689_s18, 6 }
  0x44   : > { %v1497_v2 = vld [vmem:[%s1852_s8 + $0x38] sm:$0xff]   ;;  %1340 = vmatprep.subr.bf16.mxu1 %v1496_v1  ;;  %v1501_v6 = vld [vmem:[%s1852_s8 + $0x30] sm:$0xff]   ;;  %v1504_v9 = vld [vmem:[%s1852_s8 + $0xe8] sm:$0xff]   ;;  %s1896_s20 = scalar_select %p294_p3, %s1689_s18, 1 }
  0x45   : > { %v1498_v3 = vld [vmem:[%s1852_s8 + $0xb8] sm:$0xff]   ;;  %1301 = vmatpush3.bf16.msra.mxu0 %v1497_v2  ;;  %v1502_v7 = vld [vmem:[%s1852_s8 + $0xb0] sm:$0xff]   ;;  %v1505_v10 = vld [vmem:[%s1852_s8 + $0x28] sm:$0xff]   ;;  %s1063_s10 = sshll.u32 %s290_s9, 4  ;;  %s1913_s13 = scalar_lea.hbm %s1965_s4, %s1266_s11  ;;  %s1908_s10 = int_to_ptr.vmem [resolvable:$true] %s1063_s10 }
  0x46   : > { %1341 = vmatpush3.bf16.msra.mxu1 %v1498_v3  ;;  %1302 = vmatprep.subr.bf16.mxu0 %v1499_v4  ;;  %v1506_v11 = vld [vmem:[%s1852_s8 + $0xa8] sm:$0xff]   ;;  %v1507_v12 = vld [vmem:[%s1852_s8 + $0x60] sm:$0xff]   ;;  %v1511_v16 = vld [vmem:[%s1852_s8 + $0x58] sm:$0xff]   ;;  %s296_s27 = scalar_lea.vmem %s1963_s2, %s1896_s20  ;;  %s299_s5 = scalar_lea.vmem %s1964_s3, %s1896_s20 }
  0x47   : > { %1342 = vmatprep.subr.bf16.mxu1 %v1500_v5  ;;  %v1508_v13 = vld [vmem:[%s1852_s8 + $0xe0] sm:$0xff]   ;;  %v1512_v17 = vld [vmem:[%s1852_s8 + $0xd8] sm:$0xff]   ;;  %v1515_v20 = vld [vmem:[%s1852_s8 + $0x50] sm:$0xff]   ;;  %s1048_s18 = scalar_lea.sflag [#allocation5], %s1848_s14  ;;  %s1613_s22 = scalar_lea.vmem %s1908_s10, 512 }
  0x48   : > { %v1509_v14 = vld [vmem:[%s1852_s8 + $0x20] sm:$0xff]   ;;  %v1513_v18 = vld [vmem:[%s1852_s8 + $0x18] sm:$0xff]   ;;  %v1516_v21 = vld [vmem:[%s1852_s8 + $0xd0] sm:$0xff]   ;;  %p1614_p12 = scmp.ne.s32.totalorder %s1908_s10, %s1613_s22  ;;  %p1984_p13 = scmp.ne.s32.totalorder %s1977_s26, 0 }
  0x49   : > { %1303 = vmatpush3.bf16.msra.mxu0 %v1501_v6  ;;  %v1510_v15 = vld [vmem:[%s1852_s8 + $0xa0] sm:$0xff]   ;;  %v1514_v19 = vld [vmem:[%s1852_s8 + $0x98] sm:$0xff]   ;;  %v1517_v22 = vld [vmem:[%s1852_s8 + $0x10] sm:$0xff]   ;;  %s1706_s24 = smov [#allocation8]  }
  0x4a   : > { %1343 = vmatpush3.bf16.msra.mxu1 %v1502_v7  ;;  %1304 = vmatprep.subr.bf16.mxu0 %v1503_v8  ;;  %v1518_v23 = vld [vmem:[%s1852_s8 + $0x90] sm:$0xff]   ;;  %v1519_v24 = vld [vmem:[%s1852_s8 + $0x48] sm:$0xff]   ;;  %v1523_v28 = vld [vmem:[%s1852_s8 + $0x40] sm:$0xff]   ;;  %p1615_p4 = pnand %p1614_p12, %p1984_p13  ;;  %s1617_s29 = sshll.u32 %s1706_s24, 4  ;;  %s1618_s29 = int_to_ptr.vmem [resolvable:$false] %s1617_s29 }
  0x4b   : > { %1344 = vmatprep.subr.bf16.mxu1 %v1504_v9  ;;  %v1520_v25 = vld [vmem:[%s1852_s8 + $0xc8] sm:$0xff]   ;;  %v1524_v29 = vld [vmem:[%s1852_s8 + $0xc0] sm:$0xff]   ;;  %v1533_v36 = vld [vmem:[%s1852_s8 + $0x118] sm:$0xff]   ;;  %p1620_p8 = scmp.lt.s32.totalorder %s1908_s10, %s1618_s29 }
  0x4c   : > { %v1521_v26 = vld [vmem:[%s1852_s8 + $0x8] sm:$0xff]   ;;  %v1525_v30 = vld [vmem:[%s1852_s8] sm:$0xff]   ;;  %v1540_v39 = vld [vmem:[%s1852_s8 + $0x110] sm:$0xff]   ;;  %p1616_p6 = pneg %p1615_p4 }
  0x4d   : > { %1305 = vmatpush3.bf16.msra.mxu0 %v1505_v10  ;;  %v1522_v27 = vld [vmem:[%s1852_s8 + $0x88] sm:$0xff]   ;;  %v1526_v31 = vld [vmem:[%s1852_s8 + $0x80] sm:$0xff]   ;;  %v1543_v43 = vld [vmem:[#allocation3 + $0x5c] ss:$20 sps:$4 sm:$0xff]  }
  0x4e   : > { %1345 = vmatpush3.bf16.msra.mxu1 %v1506_v11  ;;  %1306 = vmatprep.subr.bf16.mxu0 %v1507_v12  ;;  %v1527_v32 = vld [vmem:[#allocation3] ss:$20 sps:$4 sm:$0xff]   ;;  %v1529_v33 = vld [vmem:[#allocation3 + $0x4] ss:$20 sps:$4 sm:$0xff]   ;;  %v1530_v34 = vld [vmem:[#allocation3 + $0x8] ss:$20 sps:$4 sm:$0xff]  }
  0x4f   : > { %1346 = vmatprep.subr.bf16.mxu1 %v1508_v13  ;;  %v1532_v35 = vld [vmem:[#allocation3 + $0xc] ss:$20 sps:$4 sm:$0xff]   ;;  %779 = vmatprep.mubr.bf16.mxu0 %v1529_v33  ;;  %v1536_v38 = vld [vmem:[#allocation3 + $0x34] ss:$20 sps:$4 sm:$0xff]   ;;  %v1539_v41 = vld [vmem:[#allocation3 + $0x30] ss:$20 sps:$4 sm:$0xff]  }
  0x50   : > { %844 = vmatprep.mubr.bf16.mxu1 %v1532_v35  ;;  %v1534_v37 = vld [vmem:[#allocation3 + $0x2c] ss:$20 sps:$4 sm:$0xff]   ;;  %v1538_v40 = vld [vmem:[#allocation3 + $0x28] ss:$20 sps:$4 sm:$0xff]   ;;  %v1545_v46 = vld [vmem:[#allocation3 + $0x50] ss:$20 sps:$4 sm:$0xff]  }
  0x51   : > { %1307 = vmatpush3.bf16.msra.mxu0 %v1509_v14  ;;  %v1541_v42 = vld [vmem:[#allocation3 + $0x54] ss:$20 sps:$4 sm:$0xff]   ;;  %v1554_v45 = vld [vmem:[%s1852_s8 + $0x100] sm:$0xff]   ;;  %v1546_v47 = vld [vmem:[#allocation3 + $0x58] ss:$20 sps:$4 sm:$0xff]  }
  0x52   : > { %1347 = vmatpush3.bf16.msra.mxu1 %v1510_v15  ;;  %1308 = vmatprep.subr.bf16.mxu0 %v1511_v16  ;;  %v1547_v44 = vld [vmem:[%s1852_s8 + $0x108] sm:$0xff]   ;;  %v1548_v48 = vld [vmem:[#allocation3 + $0x7c] ss:$20 sps:$4 sm:$0xff]   ;;  %v1550_v49 = vld [vmem:[#allocation3 + $0x84] ss:$20 sps:$4 sm:$0xff]   ;;  %s1619_s8 = scalar_lea.vmem %s1618_s29, 1024 }
  0x53   : > { %1348 = vmatprep.subr.bf16.mxu1 %v1512_v17  ;;  %v1552_v50 = vld [vmem:[#allocation3 + $0x78] ss:$20 sps:$4 sm:$0xff]   ;;  %v1553_v51 = vld [vmem:[#allocation3 + $0x80] ss:$20 sps:$4 sm:$0xff]   ;;  %v1555_v52 = vld [vmem:[#allocation3 + $0x10] ss:$20 sps:$4 sm:$0xff]   ;;  %p1621_p10 = scmp.lt.s32.totalorder %s1619_s8, %s1613_s22 }
  0x54   : > { %v1556_v53 = vld [vmem:[#allocation3 + $0x60] ss:$20 sps:$4 sm:$0xff]   ;;  %v1557_v54 = vld [vmem:[#allocation3 + $0x38] ss:$20 sps:$4 sm:$0xff]   ;;  %v1558_v55 = vld [vmem:[#allocation3 + $0x88] ss:$20 sps:$4 sm:$0xff]  }
  0x55   : > { %1309 = vmatpush3.bf16.msra.mxu0 %v1513_v18  ;;  %p1622_p0 = por %p1621_p10, %p1620_p8 }
  0x56   : > { %1349 = vmatpush3.bf16.msra.mxu1 %v1514_v19  ;;  %1310 = vmatprep.subr.bf16.mxu0 %v1515_v20 }
  0x57   : > { %1350 = vmatprep.subr.bf16.mxu1 %v1516_v21  ;;  %p1623_p1 = pnand %p1622_p0, %p1616_p6 }
  0x59   : > { %1311 = vmatpush3.bf16.msra.mxu0 %v1517_v22 }
  0x5a   : > { %1351 = vmatpush3.bf16.msra.mxu1 %v1518_v23  ;;  %1312 = vmatprep.subr.bf16.mxu0 %v1519_v24 }
  0x5b   : > { %1352 = vmatprep.subr.bf16.mxu1 %v1520_v25 }
  0x5d   : > { %1313 = vmatpush3.bf16.msra.mxu0 %v1521_v26 }
  0x5e   : > { %1353 = vmatpush3.bf16.msra.mxu1 %v1522_v27  ;;  %1314 = vmatprep.subr.bf16.mxu0 %v1523_v28 }
  0x5f   : > { %1354 = vmatprep.subr.bf16.mxu1 %v1524_v29 }
  0x61   : > { %1315 = vmatpush3.bf16.msra.mxu0 %v1525_v30 }
  0x62   : > { %1355 = vmatpush3.bf16.msra.mxu1 %v1526_v31  ;;  %1388 = vmatprep.subr.bf16.mxu0 %v1533_v36 }
  0x63   : > { %1404 = vmatprep.subr.bf16.mxu1 %v1533_v36 }
  0x64   : > { %780 = vmatmul.mubr.bf16.vlgmr.msra.gmra.mxu0 %v1527_v32 }
  0x65   : > { %845 = vmatmul.mubr.bf16.vlgmr.msra.gmra.mxu1 %v1530_v34  ;;  %1389 = vmatpush3.bf16.msra.mxu0 %v1533_v36 }
  0x66   : > { %1408 = vmatpush3.bf16.msra.mxu1 %v1533_v36  ;;  %787 = vmatprep.mubr.bf16.mxu0 %v1534_v37 }
  0x67   : > { %852 = vmatprep.mubr.bf16.mxu1 %v1536_v38  ;;  %1390 = vmatprep.subr.bf16.mxu0 %v1540_v39  ;;  %v1255_v38 = vld [vmem:[%s296_s27] ss:$0 sm:$0xff] }
  0x68   : > { %1405 = vmatprep.subr.bf16.mxu1 %v1540_v39 }
  0x69   : > { %1391 = vmatpush3.bf16.msra.mxu0 %v1540_v39 }
  0x6a   : > { %1409 = vmatpush3.bf16.msra.mxu1 %v1540_v39  ;;  %1392 = vmatprep.subr.bf16.mxu0 %v1547_v44 }
  0x6b   : > { %1406 = vmatprep.subr.bf16.mxu1 %v1547_v44 }
  0x6c   : > { %788 = vmatmul.mubr.bf16.gmra.mxu0 %v1538_v40 }
  0x6d   : > { %853 = vmatmul.mubr.bf16.gmra.mxu1 %v1539_v41  ;;  %795 = vmatprep.mubr.bf16.mxu0 %v1541_v42 }
  0x6e   : > { %860 = vmatprep.mubr.bf16.mxu1 %v1543_v43  ;;  %1393 = vmatpush3.bf16.msra.mxu0 %v1547_v44 }
  0x6f   : > { %1410 = vmatpush3.bf16.msra.mxu1 %v1547_v44  ;;  %1394 = vmatprep.subr.bf16.mxu0 %v1554_v45 }
  0x70   : > { %1407 = vmatprep.subr.bf16.mxu1 %v1554_v45 }
  0x72   : > { %1395 = vmatpush3.bf16.msra.mxu0 %v1554_v45 }
  0x73   : > { %1411 = vmatpush3.bf16.msra.mxu1 %v1554_v45 }
  0x74   : > { %796 = vmatmul.mubr.bf16.gmra.mxu0 %v1545_v46 }
  0x75   : > { %861 = vmatmul.mubr.bf16.gmra.mxu1 %v1546_v47  ;;  %803 = vmatprep.mubr.bf16.mxu0 %v1548_v48 }
  0x76   : > { %868 = vmatprep.mubr.bf16.mxu1 %v1550_v49 }
  0x7c   : > { %804 = vmatmul.mubr.bf16.gmra.mxu0 %v1552_v50 }
  0x7d   : > { %869 = vmatmul.mubr.bf16.gmra.mxu1 %v1553_v51  ;;  %1396 = vmatprep.mubr.msk.bf16.mxu0 %vm734_vm0, %v1555_v52 }
  0x7e   : > { %1400 = vmatprep.mubr.msk.bf16.mxu1 %vm734_vm0, %v1556_v53 }
  0x84   : > { %1397 = vmatmul.mubr.msk.bf16.vlgmr.msra.gmra.mxu0 %vm734_vm0, %v1557_v54  ;;  %v1256_v54 = vld [vmem:[%s299_s5] ss:$0 sm:$0xff] }
  0x85   : > { %1401 = vmatmul.mubr.msk.bf16.vlgmr.msra.gmra.mxu1 %vm734_vm0, %v1558_v55 }
 0x124   : > { %v1316_v56 = vpop.f32.mrf.mxu0 }
 0x125   : > { %v1356_v57 = vpop.f32.mrf.mxu1 }
 0x126   : > { %v1317_v58 = vpop.f32.mrf.mxu0 }
 0x127   : > { %v1357_v59 = vpop.f32.mrf.mxu1  ;;  %v1318_v25 = vadd.f32 %v1317_v58, %v1316_v56 }
 0x128   : > { %v1319_v60 = vpop.f32.mrf.mxu0  ;;  %v1358_v26 = vadd.f32 %v1357_v59, %v1356_v57 }
 0x129   : > { %v1359_v61 = vpop.f32.mrf.mxu1 }
 0x12a   : > { %v1320_v62 = vpop.f32.mrf.mxu0  ;;  %v847_v44 = vadd.f32 %v1358_v26, %v1318_v25 }
 0x12b   : > { %v1360_v63 = vpop.f32.mrf.mxu1  ;;  %v1321_v40 = vadd.f32 %v1320_v62, %v1319_v60 }
 0x12c   : > { %v1322_v0 = vpop.f32.mrf.mxu0  ;;  %v1361_v41 = vadd.f32 %v1360_v63, %v1359_v61 }
 0x12d   : > { %v1362_v1 = vpop.f32.mrf.mxu1 }
 0x12e   : > { %v1323_v2 = vpop.f32.mrf.mxu0  ;;  %v850_v62 = vadd.f32 %v1361_v41, %v1321_v40 }
 0x12f   : > { %v1363_v3 = vpop.f32.mrf.mxu1  ;;  %v1324_v19 = vadd.f32 %v1323_v2, %v1322_v0 }
 0x130   : > { %v1325_v4 = vpop.f32.mrf.mxu0  ;;  %v1364_v20 = vadd.f32 %v1363_v3, %v1362_v1 }
 0x131   : > { %v1365_v5 = vpop.f32.mrf.mxu1 }
 0x132   : > { %v1326_v6 = vpop.f32.mrf.mxu0  ;;  %v855_v34 = vadd.f32 %v1364_v20, %v1324_v19 }
 0x133   : > { %v1366_v7 = vpop.f32.mrf.mxu1  ;;  %v1327_v31 = vadd.f32 %v1326_v6, %v1325_v4 }
 0x134   : > { %v1328_v8 = vpop.f32.mrf.mxu0  ;;  %v1367_v32 = vadd.f32 %v1366_v7, %v1365_v5 }
 0x135   : > { %v1368_v9 = vpop.f32.mrf.mxu1 }
 0x136   : > { %v1329_v10 = vpop.f32.mrf.mxu0  ;;  %v858_v53 = vadd.f32 %v1367_v32, %v1327_v31 }
 0x137   : > { %v1369_v11 = vpop.f32.mrf.mxu1  ;;  %v1330_v28 = vadd.f32 %v1329_v10, %v1328_v8 }
 0x138   : > { %v1331_v12 = vpop.f32.mrf.mxu0  ;;  %v1370_v29 = vadd.f32 %v1369_v11, %v1368_v9 }
 0x139   : > { %v1371_v13 = vpop.f32.mrf.mxu1 }
 0x13a   : > { %v1332_v14 = vpop.f32.mrf.mxu0  ;;  %v863_v49 = vadd.f32 %v1370_v29, %v1330_v28 }
 0x13b   : > { %v1372_v15 = vpop.f32.mrf.mxu1  ;;  %v1333_v45 = vadd.f32 %v1332_v14, %v1331_v12 }
 0x13c   : > { %v1334_v16 = vpop.f32.mrf.mxu0  ;;  %v1373_v46 = vadd.f32 %v1372_v15, %v1371_v13 }
 0x13d   : > { %v1374_v17 = vpop.f32.mrf.mxu1 }
 0x13e   : > { %v1335_v18 = vpop.f32.mrf.mxu0  ;;  %v866_v2 = vadd.f32 %v1373_v46, %v1333_v45 }
 0x13f   : > { %v1375_v21 = vpop.f32.mrf.mxu1  ;;  %v1336_v22 = vadd.f32 %v1335_v18, %v1334_v16 }
 0x140   : > { %v1376_v23 = vadd.f32 %v1375_v21, %v1374_v17  ;;  %v1337_v24 = vpop.f32.mrf.mxu0 }
 0x141   : > { %v1377_v27 = vpop.f32.mrf.mxu1 }
 0x142   : > { %v1338_v30 = vpop.f32.mrf.mxu0  ;;  %v871_v39 = vadd.f32 %v1376_v23, %v1336_v22 }
 0x143   : > { %v1378_v33 = vpop.f32.mrf.mxu1  ;;  %v1339_v35 = vadd.f32 %v1338_v30, %v1337_v24 }
 0x144   : > { %v1379_v36 = vadd.f32 %v1378_v33, %v1377_v27  ;;  %v1398_v37 = vpop.f32.mrf.mxu0 }
 0x145   : > { %v920_v42 = vadd.f32 %v1398_v37, %v855_v34  ;;  %v1402_v43 = vpop.f32.mrf.mxu1 }
 0x146   : > { %v936_v47 = vadd.f32 %v1402_v43, %v871_v39  ;;  %v911_v48 = vpop.f32.mrf.mxu0  ;;  %v874_v58 = vadd.f32 %v1379_v36, %v1339_v35 }
 0x147   : > { %v978_v50 = vmul.f32 %v1255_v38, %v920_v42  ;;  %v912_v51 = vadd.f32 %v911_v48, %v847_v44  ;;  %v927_v52 = vpop.f32.mrf.mxu1 }
 0x148   : > { %v982_v55 = vmul.f32 %v1255_v38, %v936_v47  ;;  %v928_v56 = vadd.f32 %v927_v52, %v863_v49  ;;  %v1399_v57 = vpop.f32.mrf.mxu0 }
 0x149   : > { %v976_v59 = vmul.f32 %v1255_v38, %v912_v51  ;;  %v923_v60 = vadd.f32 %v1399_v57, %v858_v53  ;;  %v1403_v61 = vpop.f32.mrf.mxu1  ;;  %v993_v3 = vadd.f32 %v1256_v54, %v978_v50 }
 0x14a   : > { %v980_v63 = vmul.f32 %v1255_v38, %v928_v56  ;;  %v939_v0 = vadd.f32 %v1403_v61, %v874_v58  ;;  %v914_v1 = vpop.f32.mrf.mxu0  ;;  %v997_v7 = vadd.f32 %v1256_v54, %v982_v55 }
 0x14b   : > { %v979_v4 = vmul.f32 %v1255_v38, %v923_v60  ;;  %v915_v5 = vadd.f32 %v914_v1, %v850_v62  ;;  %v930_v6 = vpop.f32.mrf.mxu1  ;;  %v991_v10 = vadd.f32 %v1256_v54, %v976_v59  ;;  %v1001_v16 = vmax.f32 %v993_v3, 0.0 }
 0x14c   : > { %v983_v8 = vmul.f32 %v1255_v38, %v939_v0  ;;  %v931_v9 = vadd.f32 %v930_v6, %v866_v2  ;;  %v995_v13 = vadd.f32 %v1256_v54, %v980_v63  ;;  %v1005_v19 = vmax.f32 %v997_v7, 0.0 }
 0x14d   : > { %v994_v11 = vadd.f32 %v1256_v54, %v979_v4  ;;  %v977_v12 = vmul.f32 %v1255_v38, %v915_v5  ;;  %v999_v22 = vmax.f32 %v991_v10, 0.0 }
 0x14e   : > { %v998_v14 = vadd.f32 %v1256_v54, %v983_v8  ;;  %v981_v15 = vmul.f32 %v1255_v38, %v931_v9  ;;  %v1003_v25 = vmax.f32 %v995_v13, 0.0 }
 0x14f   : > { %v1002_v17 = vmax.f32 %v994_v11, 0.0  ;;  %v992_v18 = vadd.f32 %v1256_v54, %v977_v12 }
 0x150   : > { %v1006_v20 = vmax.f32 %v998_v14, 0.0  ;;  %v996_v21 = vadd.f32 %v1256_v54, %v981_v15 }
 0x151   : > { %v1285_v23 = vpack.c.bf16 %v1002_v17, %v1001_v16  ;;  %v1000_v24 = vmax.f32 %v992_v18, 0.0 }
 0x152   : > { %v1295_v26 = vpack.c.bf16 %v1006_v20, %v1005_v19  ;;  %v1004_v27 = vmax.f32 %v996_v21, 0.0 }
 0x153   : > { %1297 = vst [vmem:[%s290_s9 + $0x8] sm:$0xff] %v1285_v23   ;;  %v1280_v28 = vpack.c.bf16 %v1000_v24, %v999_v22 }
 0x154   : > { %1299 = vst [vmem:[%s290_s9 + $0x18] sm:$0xff] %v1295_v26   ;;  %v1290_v29 = vpack.c.bf16 %v1004_v27, %v1003_v25 }
 0x155   : > { %1281 = vst [vmem:[%s290_s9] sm:$0xff] %v1280_v28  }
 0x156   : > { %1298 = vst [vmem:[%s290_s9 + $0x10] sm:$0xff] %v1290_v29  }
 0x157   : > { %1626 = shalt.err (!%p1623_p1)
}
 0x158   : > { %s1627_s20 = scalar_lea.hbm %s1913_s13, 512  ;;  %s1631_s27 = scalar_lea.hbm %s1965_s4, 1024 }
 0x159   : > { %p1628_p5 = scmp.ne.s32.totalorder %s1913_s13, %s1627_s20  ;;  %p1632_p11 = scmp.lt.s32.totalorder %s1913_s13, %s1965_s4 }
 0x15a   : > { %p1633_p2 = scmp.lt.s32.totalorder %s1631_s27, %s1627_s20 }
 0x15b   : > { %p1629_p7 = pnand %p1628_p5, %p1984_p13 }
 0x15c   : > { %p1634_p3 = por %p1633_p2, %p1632_p11 }
 0x15d   : > { %p1630_p9 = pneg %p1629_p7 }
 0x15f   : > { %p1635_p12 = pnand %p1634_p3, %p1630_p9 }
 0x161   : > { %1638 = shalt.err (!%p1635_p12)
}
 0x162   : > { %s1707_s5 = smov 64   ;;  %s1708_s30 = smov 128  }
 0x163   : > { %s1709_s9 = smov 4  }
 0x164   : > { %1420 = dma.vmem_to_hbm [thread:$0]  (%p1984_p13), %s1908_s10, 512, %s1913_s13, %s1048_s18, %s1707_s5, %s1708_s30, %s1709_s9  }
 0x165 PF: > { %s1985_s11 = sld [smem:[#allocation12_spill]] }
 0x166   : > { %s1986_s12 = sld [smem:[#allocation14_spill]] }
 0x167   : > { %s1987_s21 = sld [smem:[#allocation13_spill]] }
 0x16b   : > { %s1078_s22 = sand.u32 1, %s1985_s11  }
 0x16c   : > { %p1988_p4 = scmp.ne.s32.totalorder %s1986_s12, 0  ;;  %s1079_s24 = scalar_lea.sflag [#allocation5], %s1078_s22 }
 0x16d   : > { %p1989_p6 = scmp.ge.s32.totalorder %s1987_s21, 2 }
 0x16f   : > { %p1431_p8 = pnand %p1989_p6, %p1988_p4 }
 0x171   : > { %p1432_p10 = pneg %p1431_p8 }
 0x173   : > { %1672 = dma.done.wait (%p1432_p10), %s1079_s24, 512  }
 0x174   : > { %1674 = vsyncadd (%p1432_p10), %s1079_s24, 4294966784  ;;  %s21_s20 = sadd.s32 1, %s1987_s21   ;;  %s1990_s26 = smov %s1835_s15 }
 0x175   : > { %p18_p0 = scmp.ge.s32.totalorder %s21_s20, 4   ;;  %s1991_s15 = smov %s1681_s16 }
 0x176   : > { %s1992_s16 = smov %s1685_s17  ;;  %s1993_s17 = smov %s1990_s26 }
 0x177   : > { %s1994_s18 = smov %s1693_s19  ;;  %s1995_s19 = smov %s1997_s7 }
 0x178   :  { %20 = sbr.rel (!%p18_p0) target bundleno = 7 (0x7), region = 101 }
 0x17d   :  { %1084 = vsyncpa [#allocation4], 1 }
 0x17e   :  { %1086 = vsyncpa [#allocation4 + $0x1], 1 }
 0x17f   :  { %1087 = vsyncpa [#allocation7], 1 }
 0x180   :  { %1089 = vsyncpa [#allocation7 + $0x1], 1 }
 0x181   :  { %1090 = vsyncpa [#allocation5], 1 }
 0x182   :  { %1092 = vsyncpa [#allocation5 + $0x1], 1 }

</bundles_post_ra>
